<compile_context>
chip_gen: v7x
topology: tpu7x:2x2x1
jax: 0.10.0
libtpu: 0.0.40
codegen_flags: <defaults>
</compile_context>

<pallas_src>
import functools
import math

import jax
import jax.numpy as jnp
from jax.experimental import pallas as pl
from jax.experimental.pallas import tpu as pltpu


# ----------------------------------------------------------------------------
# Fused Pallas kernels
# ----------------------------------------------------------------------------

def _mha_ln_kernel(x_ref, kv_ref, mask_ref, wqkv_ref, bqkv_ref, wo_ref, bo_ref,
                   gamma_ref, beta_ref, o_ref, aw_ref, *,
                   num_heads, scale, eps, self_attn):
    """One batch element: fused QKV proj + attention + Wo + residual + LayerNorm."""
    x = x_ref[0]                                   # (Sq, D) f32
    mask = mask_ref[0]                             # (Sq, Sk) f32, 1.0 == masked
    D = x.shape[-1]
    dh = D // num_heads

    xb = x.astype(jnp.bfloat16)
    wqkv = wqkv_ref[...]                           # (D, 3D) bf16
    bqkv = bqkv_ref[...]                           # (1, 3D) f32

    if self_attn:
        qkv = jnp.dot(xb, wqkv, preferred_element_type=jnp.float32) + bqkv
        q = qkv[:, :D]
        k = qkv[:, D:2 * D]
        v = qkv[:, 2 * D:]
    else:
        kv_in = kv_ref[0].astype(jnp.bfloat16)     # (Sk, D)
        q = jnp.dot(xb, wqkv[:, :D],
                    preferred_element_type=jnp.float32) + bqkv[:, :D]
        kvp = jnp.dot(kv_in, wqkv[:, D:],
                      preferred_element_type=jnp.float32) + bqkv[:, D:]
        k = kvp[:, :D]
        v = kvp[:, D:]

    neg = mask * (-1e9)                            # hoisted out of the head loop
    head_outs = []
    for h in range(num_heads):                     # static unroll, H small
        qh = q[:, h * dh:(h + 1) * dh].astype(jnp.bfloat16)
        kh = k[:, h * dh:(h + 1) * dh].astype(jnp.bfloat16)
        vh = v[:, h * dh:(h + 1) * dh].astype(jnp.bfloat16)
        # s = qh @ kh.T  (contract last dims, no explicit transpose)
        s = jax.lax.dot_general(qh, kh, (((1,), (1,)), ((), ())),
                                preferred_element_type=jnp.float32) * scale
        s = s + neg
        s = s - jnp.max(s, axis=-1, keepdims=True)
        e = jnp.exp(s)
        p = e / jnp.sum(e, axis=-1, keepdims=True)
        aw_ref[0, h] = p.astype(aw_ref.dtype)
        head_outs.append(jnp.dot(p.astype(jnp.bfloat16), vh,
                                 preferred_element_type=jnp.float32))
    concat = jnp.concatenate(head_outs, axis=-1)   # (Sq, D) in concat layout

    out = jnp.dot(concat.astype(jnp.bfloat16), wo_ref[...],
                  preferred_element_type=jnp.float32) + bo_ref[...]
    y = out + x                                    # residual add (f32)
    mu = jnp.mean(y, axis=-1, keepdims=True)
    var = jnp.mean((y - mu) * (y - mu), axis=-1, keepdims=True)
    yn = (y - mu) * jax.lax.rsqrt(var + eps)
    o_ref[0] = (yn * gamma_ref[...] + beta_ref[...]).astype(o_ref.dtype)


def mha_ln_block(mha_p, ln_p, x, kv, mask, num_heads, *, self_attn, eps=1e-6):
    """x: (B,Sq,D); kv: (B,Sk,D); mask: (B,Sq,Sk) with 1.0 == masked.

    Returns (LayerNorm(x + MHA(x, kv)), attention_weights (B,H,Sq,Sk))."""
    B, Sq, D = x.shape
    Sk = kv.shape[1]
    dh = D // num_heads
    kernel = functools.partial(_mha_ln_kernel, num_heads=num_heads,
                               scale=1.0 / math.sqrt(dh), eps=eps,
                               self_attn=self_attn)
    out, aw = pl.pallas_call(
        kernel,
        out_shape=(
            jax.ShapeDtypeStruct((B, Sq, D), x.dtype),                  # output
            jax.ShapeDtypeStruct((B, num_heads, Sq, Sk), jnp.float32),  # attn weights
        ),
        grid=(B,),
        in_specs=[
            pl.BlockSpec((1, Sq, D), lambda b: (b, 0, 0)),
            pl.BlockSpec((1, Sk, D), lambda b: (b, 0, 0)),
            pl.BlockSpec((1, Sq, Sk), lambda b: (b, 0, 0)),
            pl.BlockSpec((D, 3 * D), lambda b: (0, 0)),   # weights stay resident
            pl.BlockSpec((1, 3 * D), lambda b: (0, 0)),
            pl.BlockSpec((D, D), lambda b: (0, 0)),
            pl.BlockSpec((1, D), lambda b: (0, 0)),
            pl.BlockSpec((1, D), lambda b: (0, 0)),
            pl.BlockSpec((1, D), lambda b: (0, 0)),
        ],
        out_specs=[
            pl.BlockSpec((1, Sq, D), lambda b: (b, 0, 0)),
            pl.BlockSpec((1, num_heads, Sq, Sk), lambda b: (b, 0, 0, 0)),
        ],
        compiler_params=pltpu.CompilerParams(dimension_semantics=("parallel",)),
    )(x, kv, mask, mha_p["wqkv"], mha_p["bqkv"], mha_p["wo"], mha_p["bo"],
      ln_p["gamma"], ln_p["beta"])
    return out, aw


def _ffn_ln_kernel(x_ref, w1_ref, b1_ref, w2_ref, b2_ref, gamma_ref, beta_ref,
                   o_ref, *, eps):
    """One batch element: fused FFN (w1 + relu + w2) + residual + LayerNorm."""
    x = x_ref[0]                                   # (Sq, D) f32
    h = jnp.dot(x.astype(jnp.bfloat16), w1_ref[...],
                preferred_element_type=jnp.float32) + b1_ref[...]
    h = jnp.maximum(h, 0.0)
    y = jnp.dot(h.astype(jnp.bfloat16), w2_ref[...],
                preferred_element_type=jnp.float32) + b2_ref[...]
    y = y + x                                      # residual add (f32)
    mu = jnp.mean(y, axis=-1, keepdims=True)
    var = jnp.mean((y - mu) * (y - mu), axis=-1, keepdims=True)
    yn = (y - mu) * jax.lax.rsqrt(var + eps)
    o_ref[0] = (yn * gamma_ref[...] + beta_ref[...]).astype(o_ref.dtype)


def ffn_ln_block(ffn_p, ln_p, x, eps=1e-6):
    B, Sq, D = x.shape
    dff = ffn_p["w1"].shape[1]
    return pl.pallas_call(
        functools.partial(_ffn_ln_kernel, eps=eps),
        out_shape=jax.ShapeDtypeStruct((B, Sq, D), x.dtype),
        grid=(B,),
        in_specs=[
            pl.BlockSpec((1, Sq, D), lambda b: (b, 0, 0)),
            pl.BlockSpec((D, dff), lambda b: (0, 0)),
            pl.BlockSpec((1, dff), lambda b: (0, 0)),
            pl.BlockSpec((dff, D), lambda b: (0, 0)),
            pl.BlockSpec((1, D), lambda b: (0, 0)),
            pl.BlockSpec((1, D), lambda b: (0, 0)),
            pl.BlockSpec((1, D), lambda b: (0, 0)),
        ],
        out_specs=pl.BlockSpec((1, Sq, D), lambda b: (b, 0, 0)),
        compiler_params=pltpu.CompilerParams(dimension_semantics=("parallel",)),
    )(x, ffn_p["w1"], ffn_p["b1"], ffn_p["w2"], ffn_p["b2"],
      ln_p["gamma"], ln_p["beta"])


def _scale_pe_kernel(x_ref, pe_ref, o_ref, *, scale):
    o_ref[0] = (x_ref[0] * scale + pe_ref[0]).astype(o_ref.dtype)


def scale_and_add_pos(x, pe, d_model):
    """x: (B, S, D), pe: (1, S, D) -> x * sqrt(d_model) + pe."""
    B, S, D = x.shape
    return pl.pallas_call(
        functools.partial(_scale_pe_kernel, scale=math.sqrt(d_model)),
        out_shape=jax.ShapeDtypeStruct((B, S, D), x.dtype),
        grid=(B,),
        in_specs=[
            pl.BlockSpec((1, S, D), lambda b: (b, 0, 0)),
            pl.BlockSpec((1, S, D), lambda b: (0, 0, 0)),   # PE stays resident
        ],
        out_specs=pl.BlockSpec((1, S, D), lambda b: (b, 0, 0)),
        compiler_params=pltpu.CompilerParams(dimension_semantics=("parallel",)),
    )(x, pe)


# ----------------------------------------------------------------------------
# Model glue (plain JAX): parameters, positional encoding, layer wiring
# ----------------------------------------------------------------------------

def positional_encoding(max_pos, d_model):
    pos = jnp.arange(max_pos, dtype=jnp.float32)[:, None]           # (P, 1)
    i = jnp.arange(d_model, dtype=jnp.float32)[None, :]             # (1, D)
    angle_rates = 1.0 / jnp.power(10000.0, (2.0 * jnp.floor(i / 2.0)) / d_model)
    angles = pos * angle_rates                                       # (P, D)
    pe = jnp.where(jnp.arange(d_model)[None, :] % 2 == 0,
                   jnp.sin(angles), jnp.cos(angles))
    return pe[None, :, :]                                            # (1, P, D)


def _dense_init(key, fan_in, fan_out):
    limit = math.sqrt(6.0 / (fan_in + fan_out))
    return jax.random.uniform(key, (fan_in, fan_out), jnp.float32, -limit, limit)


def init_params(key, num_layers, d_model, num_heads, dff, vocab):
    keys = iter(jax.random.split(key, 4 + num_layers * 12))
    params = {
        "embedding": jax.random.normal(next(keys), (vocab, d_model), jnp.float32) * 0.02,
        "layers": [],
    }
    for _ in range(num_layers):
        layer = {}
        for blk in ("mha1", "mha2"):
            wq = _dense_init(next(keys), d_model, d_model)
            wk = _dense_init(next(keys), d_model, d_model)
            wv = _dense_init(next(keys), d_model, d_model)
            layer[blk] = {
                # fused QKV weight, bf16 for the MXU (f32 accumulation in-kernel)
                "wqkv": jnp.concatenate([wq, wk, wv], axis=1).astype(jnp.bfloat16),
                "bqkv": jnp.zeros((1, 3 * d_model), jnp.float32),
                "wo": _dense_init(next(keys), d_model, d_model).astype(jnp.bfloat16),
                "bo": jnp.zeros((1, d_model), jnp.float32),
            }
        layer["ffn"] = {
            "w1": _dense_init(next(keys), d_model, dff).astype(jnp.bfloat16),
            "b1": jnp.zeros((1, dff), jnp.float32),
            "w2": _dense_init(next(keys), dff, d_model).astype(jnp.bfloat16),
            "b2": jnp.zeros((1, d_model), jnp.float32),
        }
        for ln in ("ln1", "ln2", "ln3"):
            layer[ln] = {"gamma": jnp.ones((1, d_model), jnp.float32),
                         "beta": jnp.zeros((1, d_model), jnp.float32)}
        params["layers"].append(layer)
    return params


def decoder_layer(p, x, enc_output, look_ahead_mask, padding_mask, num_heads):
    # Block 1: masked self-attention + residual + LN (fused, dropout == identity)
    out1, att_w1 = mha_ln_block(p["mha1"], p["ln1"], x, x, look_ahead_mask,
                                num_heads, self_attn=True)
    # Block 2: cross-attention over encoder output + residual + LN (fused)
    out2, att_w2 = mha_ln_block(p["mha2"], p["ln2"], out1, enc_output, padding_mask,
                                num_heads, self_attn=False)
    # Point-wise feed-forward + residual + LN (fused)
    out3 = ffn_ln_block(p["ffn"], p["ln3"], out2)
    return out3, att_w1, att_w2


def decoder_forward(params, x_tokens, enc_output, look_ahead_mask, padding_mask,
                    d_model, num_heads, pe_table):
    B, Sq = x_tokens.shape
    Sk = enc_output.shape[1]

    # Embedding gather (glue) + sqrt(d_model) scale + positional encoding (Pallas).
    x = jnp.take(params["embedding"], x_tokens, axis=0)              # (B, Sq, D)
    x = scale_and_add_pos(x, pe_table[:, :Sq, :], d_model)
    # dropout: identity (eval mode)

    # Broadcast masks to (B, Sq, S*) for the fused attention kernels (heads handled in-kernel).
    la_mask = jnp.broadcast_to(look_ahead_mask, (B, 1, Sq, Sq)) \
                 .reshape(B, Sq, Sq).astype(jnp.float32)
    pad_mask = jnp.broadcast_to(padding_mask, (B, 1, Sq, Sk)) \
                 .reshape(B, Sq, Sk).astype(jnp.float32)

    attention_weights = {}
    for i, layer_p in enumerate(params["layers"]):
        x, w1, w2 = decoder_layer(layer_p, x, enc_output, la_mask, pad_mask, num_heads)
        attention_weights[f"decoder_layer{i + 1}_block1"] = w1
        attention_weights[f"decoder_layer{i + 1}_block2"] = w2
    return x, attention_weights


# ----------------------------------------------------------------------------
# Main
# ----------------------------------------------------------------------------

if __name__ == "__main__":
    num_layers = 2
    d_model = 32
    num_heads = 4
    dff = 64
    target_vocab_size = 50
    maximum_position_encoding = 16
    dropout_rate = 0.1  # unused: eval-mode forward

    B, Sq, Sk = 2, 8, 10

    key = jax.random.PRNGKey(0)
    k_par, k_tok, k_enc = jax.random.split(key, 3)

    params = init_params(k_par, num_layers, d_model, num_heads, dff, target_vocab_size)
    pe_table = positional_encoding(maximum_position_encoding, d_model)

    x_tokens = jax.random.randint(k_tok, (B, Sq), 0, target_vocab_size, dtype=jnp.int32)
    enc_output = jax.random.normal(k_enc, (B, Sk, d_model), jnp.float32)

    # look-ahead mask: 1.0 above the diagonal (mask future positions).
    look_ahead_mask = jnp.triu(jnp.ones((Sq, Sq), jnp.float32), k=1)[None, None, :, :]
    # padding mask: mark the last two encoder positions of batch element 1 as padded.
    padding_mask = jnp.zeros((B, 1, 1, Sk), jnp.float32).at[1, 0, 0, -2:].set(1.0)

    out, attn_weights = decoder_forward(params, x_tokens, enc_output,
                                        look_ahead_mask, padding_mask,
                                        d_model, num_heads, pe_table)
    jax.block_until_ready(out)
    for v in attn_weights.values():
        jax.block_until_ready(v)

    assert out.shape == (B, Sq, d_model)
    assert attn_weights["decoder_layer1_block1"].shape == (B, num_heads, Sq, Sq)
    assert attn_weights["decoder_layer2_block2"].shape == (B, num_heads, Sq, Sk)
    print("KERNEL_OK")
</pallas_src>

<mosaic_0001>
module attributes {stable_mosaic.version = 11 : i64} {
  func.func @_scale_pe_kernel(%arg0: i32, %arg1: memref<1x8x32xf32, #tpu.memory_space<vmem>>, %arg2: memref<1x8x32xf32, #tpu.memory_space<vmem>>, %arg3: memref<1x8x32xf32, #tpu.memory_space<vmem>>) attributes {dimension_semantics = [#tpu.dimension_semantics<parallel>], iteration_bounds = array<i64: 2>, scalar_prefetch = 0 : i64, scratch_operands = 0 : i64, tpu.core_type = #tpu.core_type<tc>, window_params = [{transform_indices = @transform_0, window_bounds = array<i64: 1, 8, 32>}, {pipeline_mode = #tpu.pipeline_mode<synchronous>, transform_indices = @transform_1, window_bounds = array<i64: 1, 8, 32>}, {transform_indices = @transform_2, window_bounds = array<i64: 1, 8, 32>}]} {
    %c0 = arith.constant 0 : index
    %c0_0 = arith.constant 0 : index
    %c0_1 = arith.constant 0 : index
    %0 = vector.load %arg1[%c0, %c0_0, %c0_1] : memref<1x8x32xf32, #tpu.memory_space<vmem>>, vector<1x8x32xf32>
    %1 = vector.shape_cast %0 : vector<1x8x32xf32> to vector<8x32xf32>
    %cst = arith.constant 5.65685415 : f32
    %2 = vector.broadcast %cst : f32 to vector<8x32xf32>
    %3 = arith.mulf %1, %2 : vector<8x32xf32>
    %c0_2 = arith.constant 0 : index
    %c0_3 = arith.constant 0 : index
    %c0_4 = arith.constant 0 : index
    %4 = vector.load %arg2[%c0_2, %c0_3, %c0_4] : memref<1x8x32xf32, #tpu.memory_space<vmem>>, vector<1x8x32xf32>
    %5 = vector.shape_cast %4 : vector<1x8x32xf32> to vector<8x32xf32>
    %6 = arith.addf %3, %5 : vector<8x32xf32>
    %c0_5 = arith.constant 0 : index
    %c0_6 = arith.constant 0 : index
    %c0_7 = arith.constant 0 : index
    %7 = vector.load %arg3[%c0_5, %c0_6, %c0_7] : memref<1x8x32xf32, #tpu.memory_space<vmem>>, vector<1x8x32xf32>
    %8 = vector.shape_cast %7 : vector<1x8x32xf32> to vector<8x32xf32>
    %9 = vector.shape_cast %6 : vector<8x32xf32> to vector<1x8x32xf32>
    tpu.vector_store %arg3[%c0_5, %c0_6, %c0_7], %9 {strides = array<i32>} : memref<1x8x32xf32, #tpu.memory_space<vmem>>, vector<1x8x32xf32>,
    return
  }
  func.func @transform_0(%arg0: i32) -> (i32, i32, i32) {
    %c0_i32 = arith.constant 0 : i32
    %c0_i32_0 = arith.constant 0 : i32
    %c0_i32_1 = arith.constant 0 : i32
    return %arg0, %c0_i32, %c0_i32_0 : i32, i32, i32
  }
  func.func @transform_1(%arg0: i32) -> (i32, i32, i32) {
    %c0_i32 = arith.constant 0 : i32
    %c0_i32_0 = arith.constant 0 : i32
    %c0_i32_1 = arith.constant 0 : i32
    %c0_i32_2 = arith.constant 0 : i32
    return %c0_i32, %c0_i32_0, %c0_i32_1 : i32, i32, i32
  }
  func.func @transform_2(%arg0: i32) -> (i32, i32, i32) {
    %c0_i32 = arith.constant 0 : i32
    %c0_i32_0 = arith.constant 0 : i32
    %c0_i32_1 = arith.constant 0 : i32
    return %arg0, %c0_i32, %c0_i32_0 : i32, i32, i32
  }
}

</mosaic_0001>

<bundles_post_ra>
// kernel: tpu_custom_call.1
= control target key start
LH: loop header
LB: loop body
LE: loop exit
PB: predicated region body
PF: predicated region fallthrough
CT: control target
= control target key end

     0   :  { %7 = vsyncpa [#allocation3], 0  ;;  %s692_s0 = inlined_call_operand.hbm [shape: f32[2,8,32], index: 0, kind: input, shape index: {}]   ;;  %s693_s1 = inlined_call_operand.hbm [shape: f32[1,8,32], index: 1, kind: input, shape index: {}]   ;;  %s694_s2 = inlined_call_operand.hbm [shape: f32[2,8,32], index: 2, kind: output, shape index: {}]  }
   0x1   :  { %9 = vsyncpa [#allocation3 + $0x1], 0 }
   0x2   :  { %10 = vsyncpa [#allocation6], 0 }
   0x3   :  { %11 = vsyncpa [#allocation4], 0 }
   0x4   :  { %13 = vsyncpa [#allocation4 + $0x1], 0  ;;  %s491_s9 = smov 0   ;;  %s493_s10 = smov 0  }
   0x5   :  { %s495_s11 = smov 0   ;;  %s497_s12 = smov 0  }
   0x6 LB: > { %s512_s13 = sadd.s32 4294967295, %s471_s12   ;;  %s272_s14 = sadd.s32 4294967294, %s471_s12   ;;  %s471_s12 = sphi %s497_s12, %s718_s12   ;;  %s467_s11 = sphi %s495_s11, %s717_s11   ;;  %s463_s10 = sphi %s493_s10, %s716_s10   ;;  %s459_s9 = sphi %s491_s9, %s715_s9  }
   0x7   : > { %p39_p0 = scmp.ne.s32.totalorder %s463_s10, %s459_s9  ;;  %p695_p1 = scmp.eq.s32.totalorder %s512_s13, 0 }
   0x8   : > { %p90_p3 = scmp.eq.s32.totalorder %s272_s14, 1  ;;  %p273_p5 = scmp.ge.s32.totalorder %s471_s12, 1 }
   0x9   : > { %p521_p4 = por %p695_p1, %p39_p0  ;;  %p97_p7 = scmp.lt.s32.totalorder %s471_s12, 3 }
   0xa   : > { %p526_p6 = por %p90_p3, %p39_p0  ;;  %s473_s18 = smov [#allocation5]  }
   0xb   : > { %s698_s15 = scalar_select %p521_p4, 1, 0 }
   0xc   : > { %s699_s16 = scalar_select %p526_p6, 1, 0 }
   0xd   : > { %p531_p8 = pnand %p273_p5, %p97_p7  ;;  %s110_s19 = sshll.u32 %s473_s18, 4  ;;  %s111_s19 = int_to_ptr.vmem [resolvable:$true] %s110_s19 }
   0xe   : > { %s539_s20 = sadd.s32 1, %s471_s12   ;;  %s26_s24 = sadd.s32 1, %s467_s11 }
   0xf   : > { %s700_s17 = scalar_select %p531_p8, 1, 0 }
  0x10   : > { %p294_p10 = pneg %p531_p8  ;;  %s23_s22 = ssub.s32 %s471_s12, %s539_s20 }
  0x11   : > { %p549_p12 = scmp.eq.s32.totalorder %s23_s22, 0  ;;  %s343_s27 = scalar_lea.hbm %s693_s1, 128 }
  0x12   : > { %p543_p11 = pnand %p294_p10, %p695_p1  ;;  %p344_p0 = scmp.ne.s32.totalorder %s693_s1, %s343_s27 }
  0x13   : > { %s702_s23 = scalar_select %p549_p12, 1, 0 }
  0x14   : > { %p345_p3 = pneg %p543_p11  ;;  %p350_p10 = scmp.lt.u32.totalorder %s343_s27, %s693_s1 }
  0x16   : > { %p346_p5 = pnand %p345_p3, %p344_p0 }
  0x18   : > { %p347_p7 = pneg %p346_p5 }
  0x1a   : > { %p352_p9 = pnand %p350_p10, %p347_p7 }
  0x1c   : > { %355 = shalt.err (!%p352_p9)
}
  0x1d   : > { %s356_s4 = scalar_lea.vmem %s111_s19, 128  ;;  %p364_p6 = scmp.lt.s32.totalorder %s111_s19, %s111_s19 }
  0x1e   : > { %p357_p1 = scmp.ne.s32.totalorder %s111_s19, %s356_s4  ;;  %p365_p4 = scmp.lt.s32.totalorder %s356_s4, %s356_s4 }
  0x20   : > { %p359_p2 = pnand %p357_p1, %p345_p3  ;;  %p366_p8 = por %p365_p4, %p364_p6 }
  0x22   : > { %p360_p13 = pneg %p359_p2 }
  0x24   : > { %p367_p12 = pnand %p366_p8, %p360_p13 }
  0x26   : > { %370 = shalt.err (!%p367_p12)
}
  0x27   : > { %297 = dma.hbm_to_vmem [thread:$0]  (!%p543_p11), %s693_s1, 128, %s111_s19, [#allocation6]  }
  0x28   : > { %p703_p1 = scmp.ne.s32.totalorder %s702_s23, 0  ;;  %p34_p2 = scmp.eq.s32.totalorder %s471_s12, 0 }
  0x29   : > { %p704_p4 = scmp.ne.s32.totalorder %s467_s11, %s463_s10  ;;  %p705_p6 = scmp.eq.s32.totalorder %s512_s13, 1 }
  0x2a   : > { %s575_s7 = scalar_select %p703_p1, %s467_s11, %s26_s24  }
  0x2b   : > { %p583_p8 = por %p705_p6, %p704_p4  ;;  %p307_p9 = scmp.lt.s32.totalorder %s471_s12, 2 }
  0x2c   : > { %s121_s14 = sand.u32 1, %s467_s11   ;;  %p707_p12 = pmov %p704_p4 }
  0x2d   : > { %s276_s18 = sshll.u32 %s121_s14, 3  ;;  %s277_s21 = sshll.u32 %s471_s12, 7 }
  0x2e   : > { %p35_p13 = por %p34_p2, %p707_p12  ;;  %s596_s19 = scalar_lea.hbm %s692_s0, %s277_s21 }
  0x2f   : > { %s125_s23 = scalar_lea.vmem [#allocation2], %s276_s18  ;;  %s122_s27 = scalar_lea.sflag [#allocation3], %s121_s14 }
  0x30   : > { %s132_s24 = sshll.u32 %s125_s23, 4  ;;  %p598_p11 = pnand %p307_p9, %p35_p13  ;;  %s602_s24 = int_to_ptr.vmem [resolvable:$true] %s132_s24 }
  0x31   : > { %s371_s28 = scalar_lea.hbm %s596_s19, 128  ;;  %s376_s3 = scalar_lea.hbm %s692_s0, 256 }
  0x32   : > { %p372_p0 = scmp.ne.s32.totalorder %s596_s19, %s371_s28  ;;  %p373_p3 = pneg %p598_p11 }
  0x33   : > { %p377_p10 = scmp.lt.u32.totalorder %s596_s19, %s692_s0  ;;  %p378_p1 = scmp.lt.u32.totalorder %s376_s3, %s371_s28 }
  0x34   : > { %p374_p5 = pnand %p373_p3, %p372_p0  ;;  %p380_p4 = scmp.lt.u32.totalorder %s371_s28, %s596_s19 }
  0x35   : > { %p379_p2 = por %p378_p1, %p377_p10 }
  0x36   : > { %p375_p7 = pneg %p374_p5 }
  0x37   : > { %p381_p6 = por %p380_p4, %p379_p2 }
  0x39   : > { %p382_p9 = pnand %p381_p6, %p375_p7 }
  0x3b   : > { %385 = shalt.err (!%p382_p9)
}
  0x3c   : > { %s386_s6 = scalar_lea.vmem %s602_s24, 128  ;;  %s474_s14 = smov [#allocation2]  }
  0x3d   : > { %p387_p12 = scmp.ne.s32.totalorder %s602_s24, %s386_s6  ;;  %s391_s18 = sshll.u32 %s474_s14, 4  ;;  %s392_s18 = int_to_ptr.vmem [resolvable:$false] %s391_s18 }
  0x3e   : > { %s393_s21 = scalar_lea.vmem %s392_s18, 256  ;;  %p394_p5 = scmp.lt.s32.totalorder %s602_s24, %s392_s18 }
  0x3f   : > { %p389_p13 = pnand %p387_p12, %p373_p3  ;;  %p395_p10 = scmp.lt.s32.totalorder %s393_s21, %s386_s6 }
  0x41   : > { %p390_p0 = pneg %p389_p13  ;;  %p396_p1 = por %p395_p10, %p394_p5 }
  0x43   : > { %p397_p2 = pnand %p396_p1, %p390_p0 }
  0x45   : > { %400 = shalt.err (!%p397_p2)
}
  0x46   : > { %301 = dma.hbm_to_vmem [thread:$0]  (!%p598_p11), %s596_s19, 128, %s602_s24, %s122_s27  }
  0x47   : > { %p709_p7 = scmp.ne.s32.totalorder %s700_s17, 0 }
  0x48   : > { %s632_s22 = sand.u32 (!%p709_p7), 1, %s463_s10   ;;  %p710_p3 = scmp.ne.s32.totalorder (!%p709_p7), %s698_s15, 0 }
  0x49   : > { %141 = sbr.rel (%p709_p7) target bundleno = 109 (0x6d), region = 28  ;;  %s279_s25 = sshll.u32 (!%p709_p7), %s632_s22, 3 }
  0x4a   : > { %s144_s23 = scalar_lea.sflag (!%p709_p7), [#allocation3], %s632_s22  ;;  %s147_s28 = scalar_lea.vmem (!%p709_p7), [#allocation2], %s279_s25 }
  0x50   : > { %446 = dma.done.wait (%p710_p3), %s144_s23, 128  }
  0x51   : > { %448 = vsyncadd (%p710_p3), %s144_s23, 4294967168  ;;  %p711_p4 = scmp.eq.s32.totalorder %s512_s13, 0 }
  0x53   : > { %450 = dma.done.wait (%p711_p4), [#allocation6], 128   ;;  %p712_p11 = pmov %p711_p4 }
  0x54   : > { %v172_v0 = vld [vmem:[%s147_s28] sm:$0xff]  ;;  %v174_v1 = vld [vmem:[#allocation5] sm:$0xff]  ;;  %s171_s17 = scalar_lea.vmem [#allocation7], %s279_s25  ;;  %s283_s24 = sshll.u32 %s512_s13, 7  ;;  %vm176_vm0 = vcmask 261120  }
  0x55   : > { %452 = vsyncadd (%p712_p11), [#allocation6], 4294967168  ;;  %s192_s19 = sshll.u32 %s171_s17, 4  ;;  %v173_v2 = vmul.f32 5.656854, %v172_v0  ;;  %s650_s27 = scalar_lea.hbm %s694_s2, %s283_s24  ;;  %s645_s19 = int_to_ptr.vmem [resolvable:$true] %s192_s19 }
  0x56   : > { %s179_s29 = scalar_lea.sflag [#allocation4], %s632_s22  ;;  %s401_s30 = scalar_lea.vmem %s645_s19, 128 }
  0x57   : > { %v175_v3 = vadd.f32 %v174_v1, %v173_v2  ;;  %p402_p6 = scmp.ne.s32.totalorder %s645_s19, %s401_s30  ;;  %s475_s13 = smov [#allocation7]  }
  0x58   : > { %s405_s3 = sshll.u32 %s475_s13, 4  ;;  %s406_s3 = int_to_ptr.vmem [resolvable:$false] %s405_s3 }
  0x59   : > { %177 = vst.msk [vmem:[%s171_s17] sm:$0xff] %vm176_vm0, %v175_v3  ;;  %p403_p9 = pnand %p402_p6, %p583_p8  ;;  %s407_s4 = scalar_lea.vmem %s406_s3, 256 }
  0x5a   : > { %p408_p13 = scmp.lt.s32.totalorder %s645_s19, %s406_s3  ;;  %p409_p0 = scmp.lt.s32.totalorder %s407_s4, %s401_s30 }
  0x5b   : > { %p404_p12 = pneg %p403_p9 }
  0x5c   : > { %p410_p5 = por %p409_p0, %p408_p13 }
  0x5e   : > { %p411_p10 = pnand %p410_p5, %p404_p12 }
  0x60   : > { %414 = shalt.err (!%p411_p10)
}
  0x61   : > { %s415_s5 = scalar_lea.hbm %s650_s27, 128  ;;  %s419_s18 = scalar_lea.hbm %s694_s2, 256 }
  0x62   : > { %p416_p1 = scmp.ne.s32.totalorder %s650_s27, %s415_s5  ;;  %p420_p3 = scmp.lt.u32.totalorder %s650_s27, %s694_s2 }
  0x63   : > { %p421_p4 = scmp.lt.u32.totalorder %s419_s18, %s415_s5  ;;  %p423_p6 = scmp.lt.u32.totalorder %s415_s5, %s650_s27 }
  0x64   : > { %p417_p2 = pnand %p416_p1, %p583_p8 }
  0x65   : > { %p422_p11 = por %p421_p4, %p420_p3 }
  0x66   : > { %p418_p7 = pneg %p417_p2 }
  0x67   : > { %p424_p9 = por %p423_p6, %p422_p11 }
  0x69   : > { %p425_p12 = pnand %p424_p9, %p418_p7 }
  0x6b   : > { %428 = shalt.err (!%p425_p12)
}
  0x6c   : > { %292 = dma.vmem_to_hbm [thread:$0]  (%p583_p8), %s645_s19, 128, %s650_s27, %s179_s29  }
  0x6d PF: > { %s204_s25 = sand.u32 1, %s459_s9   ;;  %p713_p13 = scmp.ne.s32.totalorder %s699_s16, 0 }
  0x6e   : > { %p714_p0 = scmp.ge.s32.totalorder %s471_s12, 2  ;;  %s205_s23 = scalar_lea.sflag [#allocation4], %s204_s25 }
  0x70   : > { %p303_p5 = pnand %p714_p0, %p713_p13 }
  0x72   : > { %454 = dma.done.wait (!%p303_p5), %s205_s23, 128  }
  0x73   : > { %456 = vsyncadd (!%p303_p5), %s205_s23, 4294967168  ;;  %p16_p10 = scmp.ge.s32.totalorder %s539_s20, 4   ;;  %s715_s9 = smov %s463_s10 }
  0x74   : > { %s716_s10 = smov %s467_s11  ;;  %s717_s11 = smov %s575_s7 }
  0x75   : > { %s718_s12 = smov %s539_s20  ;;  %18 = sbr.rel (!%p16_p10) target bundleno = 6 (0x6), region = 77 }
  0x7c   :  { %210 = vsyncpa [#allocation3], 1 }
  0x7d   :  { %212 = vsyncpa [#allocation3 + $0x1], 1 }
  0x7e   :  { %213 = vsyncpa [#allocation6], 1 }
  0x7f   :  { %214 = vsyncpa [#allocation4], 1 }
  0x80   :  { %216 = vsyncpa [#allocation4 + $0x1], 1 }

</bundles_post_ra>
